<compile_context>
chip_gen: v7x
topology: tpu7x:2x2x1
jax: 0.10.0
libtpu: 0.0.40
codegen_flags: <defaults>
</compile_context>

<pallas_src>
import jax
import jax.numpy as jnp
from jax.experimental import pallas as pl
from jax.experimental.pallas import tpu as pltpu

# ----------------------------- problem sizes --------------------------------
OBDIM = 32    # observation dim
H1 = 64       # first hidden
H2 = 64       # second hidden
ACDIM = 8     # number of discrete actions
BATCH = 64    # small example batch (padded to 128 lanes inside the wrapper)

LANE = 128    # TPU vreg lane width


# ------------------------------ Pallas kernel -------------------------------
# Batch-on-lanes layout:
#   xT   (OBDIM, tile_b)     w1T (H1, OBDIM)   b1 (H1, 1)
#   h1T  (H1, tile_b)        w2T (H2, H1)      b2 (H2, 1)
#   h2T  (H2, tile_b)        w3T (ACDIM, H2)   b3 (ACDIM, 1)
#   zT   (ACDIM, tile_b)     gumbel (ACDIM, tile_b)
# Outputs:
#   slab   (2*ACDIM, tile_b): rows [0:ACDIM] = log_probs^T, [ACDIM:] = probs^T
#   action (1, tile_b)
def _actor_kernel(xT_ref, w1T_ref, b1_ref, w2T_ref, b2_ref, w3T_ref, b3_ref,
                  g_ref, slab_ref, action_ref):
    # ---- MLP: Linear -> ReLU -> Linear -> ReLU -> Linear (f32 on MXU) ------
    xT = xT_ref[...]
    h1 = jnp.dot(w1T_ref[...], xT, preferred_element_type=jnp.float32)
    h1 = jnp.maximum(h1 + b1_ref[...], 0.0)                  # (H1, tile_b)
    h2 = jnp.dot(w2T_ref[...], h1, preferred_element_type=jnp.float32)
    h2 = jnp.maximum(h2 + b2_ref[...], 0.0)                  # (H2, tile_b)
    z = jnp.dot(w3T_ref[...], h2, preferred_element_type=jnp.float32)
    z = z + b3_ref[...]                                      # (ACDIM, tile_b)

    # ---- LogSoftmax over the action axis (8-sublane reduction) -------------
    m = jnp.max(z, axis=0, keepdims=True)                    # (1, tile_b)
    zc = z - m
    e = jnp.exp(zc)
    s = jnp.sum(e, axis=0, keepdims=True)                    # (1, tile_b)
    log_probs = zc - jnp.log(s)
    probs = e / s                       # exact division -> column sums ~1.0

    # single merged, 128-lane-dense output slab (one unmasked store per half)
    slab_ref[:ACDIM, :] = log_probs
    slab_ref[ACDIM:, :] = probs

    # ---- Fused Categorical(logits).sample() via Gumbel-max -----------------
    # argmax(zc + g) == argmax(log_probs + g): -log(s) is a per-column shift.
    score = zc + g_ref[...]
    best = jnp.max(score, axis=0, keepdims=True)             # (1, tile_b)
    idx = jax.lax.broadcasted_iota(jnp.int32, score.shape, 0)
    act = jnp.min(jnp.where(score >= best, idx, ACDIM), axis=0, keepdims=True)
    action_ref[...] = jnp.minimum(act, ACDIM - 1)            # NaN-safety clamp


# --------------------------------- wrapper ----------------------------------
def actor_forward(x, params, sample_key, *, tile_b=None):
    """Fused forward: returns (action, probs, logits) like the PyTorch module.

    Sampling is Gumbel-max over the logits with noise from jax.random.gumbel,
    so it is distributed as Categorical(logits=logits) but not bit-identical
    to torch's RNG stream.
    """
    w1, b1, w2, b2, w3, b3 = params
    B = x.shape[0]

    # Tile choice: single grid step for small batches (no pipeline prologue,
    # one TC); 256-wide tiles (full v6e/v7x MXU pass) sharded across TCs once
    # the batch is large enough to amortize per-step overhead.
    if tile_b is None:
        tile_b = 256 if B >= 1024 else (-(-B // LANE) * LANE)
    b_pad = -(-B // tile_b) * tile_b
    num_tiles = b_pad // tile_b

    # ---- one-time layout plumbing (XLA ops, constant-foldable under jit) ---
    xT = jnp.pad(x, ((0, b_pad - B), (0, 0))).T              # (OBDIM, b_pad)
    w1T, w2T, w3T = w1.T, w2.T, w3.T                         # (out, in)
    b1T, b2T, b3T = b1.T, b2.T, b3.T                         # (out, 1)
    gumbel = jax.random.gumbel(sample_key, (ACDIM, b_pad), jnp.float32)

    # weights/biases: same block every grid step -> stay VMEM-resident
    resident = lambda shape: pl.BlockSpec(shape, lambda i: (0,) * len(shape))

    slab, action = pl.pallas_call(
        _actor_kernel,
        out_shape=(
            jax.ShapeDtypeStruct((2 * ACDIM, b_pad), jnp.float32),  # [logp|probs]^T
            jax.ShapeDtypeStruct((1, b_pad), jnp.int32),            # action
        ),
        grid_spec=pltpu.PrefetchScalarGridSpec(
            num_scalar_prefetch=0,
            grid=(num_tiles,),
            in_specs=[
                pl.BlockSpec((OBDIM, tile_b), lambda i: (0, i)),
                resident(w1T.shape), resident(b1T.shape),
                resident(w2T.shape), resident(b2T.shape),
                resident(w3T.shape), resident(b3T.shape),
                pl.BlockSpec((ACDIM, tile_b), lambda i: (0, i)),
            ],
            out_specs=(
                pl.BlockSpec((2 * ACDIM, tile_b), lambda i: (0, i)),
                pl.BlockSpec((1, tile_b), lambda i: (0, i)),
            ),
        ),
        compiler_params=pltpu.CompilerParams(
            dimension_semantics=("parallel",)),    # v7x: shard tiles over 2 TCs
    )(xT, w1T, b1T, w2T, b2T, w3T, b3T, gumbel)

    logits = slab[:ACDIM, :B].T                              # (B, ACDIM)
    probs = slab[ACDIM:, :B].T
    action = action[0, :B]
    return action, probs, logits


# ---------------------------- pure-JAX reference -----------------------------
def reference_logits(x, params):
    w1, b1, w2, b2, w3, b3 = params
    hp = jax.lax.Precision.HIGHEST
    h1 = jnp.maximum(jnp.dot(x, w1, precision=hp) + b1, 0.0)
    h2 = jnp.maximum(jnp.dot(h1, w2, precision=hp) + b2, 0.0)
    z = jnp.dot(h2, w3, precision=hp) + b3
    return jax.nn.log_softmax(z, axis=-1)


# --------------------------- parameter construction --------------------------
def init_params(key):
    """Deterministic init mimicking torch.nn.Linear's uniform(-1/sqrt(in), +)."""
    ks = jax.random.split(key, 6)

    def linear(kw, kb, fan_in, fan_out):
        bound = 1.0 / jnp.sqrt(float(fan_in))
        w = jax.random.uniform(kw, (fan_in, fan_out), jnp.float32, -bound, bound)
        b = jax.random.uniform(kb, (1, fan_out), jnp.float32, -bound, bound)
        return w, b

    w1, b1 = linear(ks[0], ks[1], OBDIM, H1)
    w2, b2 = linear(ks[2], ks[3], H1, H2)
    w3, b3 = linear(ks[4], ks[5], H2, ACDIM)
    return (w1, b1, w2, b2, w3, b3)


# ----------------------------------- main ------------------------------------
if __name__ == "__main__":
    root = jax.random.PRNGKey(0)
    k_param, k_input, k_sample = jax.random.split(root, 3)

    params = init_params(k_param)
    x = jax.random.normal(k_input, (BATCH, OBDIM), jnp.float32)

    fwd = jax.jit(actor_forward)
    action, probs, logits = fwd(x, params, k_sample)
    jax.block_until_ready((action, probs, logits))

    # correctness checks
    assert action.shape == (BATCH,)
    assert probs.shape == (BATCH, ACDIM)
    assert logits.shape == (BATCH, ACDIM)

    ref = reference_logits(x, params)
    assert bool(jnp.allclose(logits, ref, atol=1e-3, rtol=1e-3))
    assert bool(jnp.all(jnp.abs(jnp.sum(probs, axis=-1) - 1.0) < 1e-5))
    assert bool(jnp.allclose(probs, jnp.exp(logits), atol=1e-5))
    assert bool(jnp.all((action >= 0) & (action < ACDIM)))

    print("KERNEL_OK")
</pallas_src>

<mosaic_0001>
module attributes {stable_mosaic.version = 11 : i64} {
  func.func @_actor_kernel(%arg0: i32, %arg1: memref<32x128xf32, #tpu.memory_space<vmem>>, %arg2: memref<64x32xf32, #tpu.memory_space<vmem>>, %arg3: memref<64x1xf32, #tpu.memory_space<vmem>>, %arg4: memref<64x64xf32, #tpu.memory_space<vmem>>, %arg5: memref<64x1xf32, #tpu.memory_space<vmem>>, %arg6: memref<8x64xf32, #tpu.memory_space<vmem>>, %arg7: memref<8x1xf32, #tpu.memory_space<vmem>>, %arg8: memref<8x128xf32, #tpu.memory_space<vmem>>, %arg9: memref<16x128xf32, #tpu.memory_space<vmem>>, %arg10: memref<1x128xi32, #tpu.memory_space<vmem>>) attributes {dimension_semantics = [#tpu.dimension_semantics<parallel>], iteration_bounds = array<i64: 1>, scalar_prefetch = 0 : i64, scratch_operands = 0 : i64, tpu.core_type = #tpu.core_type<tc>, window_params = [{transform_indices = @transform_0, window_bounds = array<i64: 32, 128>}, {pipeline_mode = #tpu.pipeline_mode<synchronous>, transform_indices = @transform_1, window_bounds = array<i64: 64, 32>}, {pipeline_mode = #tpu.pipeline_mode<synchronous>, transform_indices = @transform_2, window_bounds = array<i64: 64, 1>}, {pipeline_mode = #tpu.pipeline_mode<synchronous>, transform_indices = @transform_3, window_bounds = array<i64: 64, 64>}, {pipeline_mode = #tpu.pipeline_mode<synchronous>, transform_indices = @transform_4, window_bounds = array<i64: 64, 1>}, {pipeline_mode = #tpu.pipeline_mode<synchronous>, transform_indices = @transform_5, window_bounds = array<i64: 8, 64>}, {pipeline_mode = #tpu.pipeline_mode<synchronous>, transform_indices = @transform_6, window_bounds = array<i64: 8, 1>}, {transform_indices = @transform_7, window_bounds = array<i64: 8, 128>}, {transform_indices = @transform_8, window_bounds = array<i64: 16, 128>}, {transform_indices = @transform_9, window_bounds = array<i64: 1, 128>}]} {
    %c0 = arith.constant 0 : index
    %c0_0 = arith.constant 0 : index
    %0 = vector.load %arg1[%c0, %c0_0] : memref<32x128xf32, #tpu.memory_space<vmem>>, vector<32x128xf32>
    %c0_1 = arith.constant 0 : index
    %c0_2 = arith.constant 0 : index
    %1 = vector.load %arg2[%c0_1, %c0_2] : memref<64x32xf32, #tpu.memory_space<vmem>>, vector<64x32xf32>
    %cst = arith.constant dense<0.000000e+00> : vector<64x128xf32>
    %2 = tpu.matmul %1, %0, %cst {dimension_numbers = #tpu.dot_dimension_numbers<[1], [0], [0], [1], [0, 0, 1, 1], [], []>} : vector<64x32xf32>, vector<32x128xf32>, vector<64x128xf32> -> vector<64x128xf32>
    %c0_3 = arith.constant 0 : index
    %c0_4 = arith.constant 0 : index
    %3 = vector.load %arg3[%c0_3, %c0_4] : memref<64x1xf32, #tpu.memory_space<vmem>>, vector<64x1xf32>
    %4 = vector.broadcast %3 : vector<64x1xf32> to vector<64x128xf32>
    %5 = arith.addf %2, %4 : vector<64x128xf32>
    %cst_5 = arith.constant 0.000000e+00 : f32
    %6 = vector.broadcast %cst_5 : f32 to vector<64x128xf32>
    %7 = arith.maximumf %5, %6 : vector<64x128xf32>
    %c0_6 = arith.constant 0 : index
    %c0_7 = arith.constant 0 : index
    %8 = vector.load %arg4[%c0_6, %c0_7] : memref<64x64xf32, #tpu.memory_space<vmem>>, vector<64x64xf32>
    %cst_8 = arith.constant dense<0.000000e+00> : vector<64x128xf32>
    %9 = tpu.matmul %8, %7, %cst_8 {dimension_numbers = #tpu.dot_dimension_numbers<[1], [0], [0], [1], [0, 0, 1, 1], [], []>} : vector<64x64xf32>, vector<64x128xf32>, vector<64x128xf32> -> vector<64x128xf32>
    %c0_9 = arith.constant 0 : index
    %c0_10 = arith.constant 0 : index
    %10 = vector.load %arg5[%c0_9, %c0_10] : memref<64x1xf32, #tpu.memory_space<vmem>>, vector<64x1xf32>
    %11 = vector.broadcast %10 : vector<64x1xf32> to vector<64x128xf32>
    %12 = arith.addf %9, %11 : vector<64x128xf32>
    %cst_11 = arith.constant 0.000000e+00 : f32
    %13 = vector.broadcast %cst_11 : f32 to vector<64x128xf32>
    %14 = arith.maximumf %12, %13 : vector<64x128xf32>
    %c0_12 = arith.constant 0 : index
    %c0_13 = arith.constant 0 : index
    %15 = vector.load %arg6[%c0_12, %c0_13] : memref<8x64xf32, #tpu.memory_space<vmem>>, vector<8x64xf32>
    %cst_14 = arith.constant dense<0.000000e+00> : vector<8x128xf32>
    %16 = tpu.matmul %15, %14, %cst_14 {dimension_numbers = #tpu.dot_dimension_numbers<[1], [0], [0], [1], [0, 0, 1, 1], [], []>} : vector<8x64xf32>, vector<64x128xf32>, vector<8x128xf32> -> vector<8x128xf32>
    %c0_15 = arith.constant 0 : index
    %c0_16 = arith.constant 0 : index
    %17 = vector.load %arg7[%c0_15, %c0_16] : memref<8x1xf32, #tpu.memory_space<vmem>>, vector<8x1xf32>
    %18 = vector.broadcast %17 : vector<8x1xf32> to vector<8x128xf32>
    %19 = arith.addf %16, %18 : vector<8x128xf32>
    %cst_17 = arith.constant dense<0xFF800000> : vector<128xf32>
    %20 = vector.multi_reduction <maximumf>, %19, %cst_17 [0] : vector<8x128xf32> to vector<128xf32>
    %21 = vector.shape_cast %20 : vector<128xf32> to vector<1x128xf32>
    %22 = vector.broadcast %21 : vector<1x128xf32> to vector<8x128xf32>
    %23 = arith.subf %19, %22 : vector<8x128xf32>
    %24 = math.exp %23 : vector<8x128xf32>
    %cst_18 = arith.constant dense<0.000000e+00> : vector<128xf32>
    %25 = vector.multi_reduction <add>, %24, %cst_18 [0] : vector<8x128xf32> to vector<128xf32>
    %26 = vector.shape_cast %25 : vector<128xf32> to vector<1x128xf32>
    %27 = math.log %26 : vector<1x128xf32>
    %28 = vector.broadcast %27 : vector<1x128xf32> to vector<8x128xf32>
    %29 = arith.subf %23, %28 : vector<8x128xf32>
    %30 = vector.broadcast %26 : vector<1x128xf32> to vector<8x128xf32>
    %31 = arith.divf %24, %30 : vector<8x128xf32>
    %c0_19 = arith.constant 0 : index
    %c0_20 = arith.constant 0 : index
    %32 = vector.load %arg9[%c0_19, %c0_20] : memref<16x128xf32, #tpu.memory_space<vmem>>, vector<8x128xf32>
    tpu.vector_store %arg9[%c0_19, %c0_20], %29 {strides = array<i32>} : memref<16x128xf32, #tpu.memory_space<vmem>>, vector<8x128xf32>,
    %c8 = arith.constant 8 : index
    %c0_21 = arith.constant 0 : index
    %33 = vector.load %arg9[%c8, %c0_21] : memref<16x128xf32, #tpu.memory_space<vmem>>, vector<8x128xf32>
    tpu.vector_store %arg9[%c8, %c0_21], %31 {strides = array<i32>} : memref<16x128xf32, #tpu.memory_space<vmem>>, vector<8x128xf32>,
    %c0_22 = arith.constant 0 : index
    %c0_23 = arith.constant 0 : index
    %34 = vector.load %arg8[%c0_22, %c0_23] : memref<8x128xf32, #tpu.memory_space<vmem>>, vector<8x128xf32>
    %35 = arith.addf %23, %34 : vector<8x128xf32>
    %cst_24 = arith.constant dense<0xFF800000> : vector<128xf32>
    %36 = vector.multi_reduction <maximumf>, %35, %cst_24 [0] : vector<8x128xf32> to vector<128xf32>
    %37 = vector.shape_cast %36 : vector<128xf32> to vector<1x128xf32>
    %38 = tpu.iota {dimensions = array<i32: 0>} : vector<8x128xi32>
    %39 = vector.broadcast %37 : vector<1x128xf32> to vector<8x128xf32>
    %40 = arith.cmpf oge, %35, %39 : vector<8x128xf32>
    %c8_i32 = arith.constant 8 : i32
    %41 = vector.broadcast %c8_i32 : i32 to vector<8x128xi32>
    %42 = arith.select %40, %38, %41 : vector<8x128xi1>, vector<8x128xi32>
    %cst_25 = arith.constant dense<2147483647> : vector<128xi32>
    %43 = vector.multi_reduction <minsi>, %42, %cst_25 [0] : vector<8x128xi32> to vector<128xi32>
    %44 = vector.shape_cast %43 : vector<128xi32> to vector<1x128xi32>
    %c7_i32 = arith.constant 7 : i32
    %45 = vector.broadcast %c7_i32 : i32 to vector<1x128xi32>
    %46 = arith.minsi %44, %45 : vector<1x128xi32>
    %c0_26 = arith.constant 0 : index
    %c0_27 = arith.constant 0 : index
    %47 = vector.load %arg10[%c0_26, %c0_27] : memref<1x128xi32, #tpu.memory_space<vmem>>, vector<1x128xi32>
    tpu.vector_store %arg10[%c0_26, %c0_27], %46 {strides = array<i32>} : memref<1x128xi32, #tpu.memory_space<vmem>>, vector<1x128xi32>,
    return
  }
  func.func @transform_0(%arg0: i32) -> (i32, i32) {
    %c0_i32 = arith.constant 0 : i32
    %c0_i32_0 = arith.constant 0 : i32
    return %c0_i32, %arg0 : i32, i32
  }
  func.func @transform_1(%arg0: i32) -> (i32, i32) {
    %c0_i32 = arith.constant 0 : i32
    %c0_i32_0 = arith.constant 0 : i32
    %c0_i32_1 = arith.constant 0 : i32
    return %c0_i32, %c0_i32_0 : i32, i32
  }
  func.func @transform_2(%arg0: i32) -> (i32, i32) {
    %c0_i32 = arith.constant 0 : i32
    %c0_i32_0 = arith.constant 0 : i32
    %c0_i32_1 = arith.constant 0 : i32
    return %c0_i32, %c0_i32_0 : i32, i32
  }
  func.func @transform_3(%arg0: i32) -> (i32, i32) {
    %c0_i32 = arith.constant 0 : i32
    %c0_i32_0 = arith.constant 0 : i32
    %c0_i32_1 = arith.constant 0 : i32
    return %c0_i32, %c0_i32_0 : i32, i32
  }
  func.func @transform_4(%arg0: i32) -> (i32, i32) {
    %c0_i32 = arith.constant 0 : i32
    %c0_i32_0 = arith.constant 0 : i32
    %c0_i32_1 = arith.constant 0 : i32
    return %c0_i32, %c0_i32_0 : i32, i32
  }
  func.func @transform_5(%arg0: i32) -> (i32, i32) {
    %c0_i32 = arith.constant 0 : i32
    %c0_i32_0 = arith.constant 0 : i32
    %c0_i32_1 = arith.constant 0 : i32
    return %c0_i32, %c0_i32_0 : i32, i32
  }
  func.func @transform_6(%arg0: i32) -> (i32, i32) {
    %c0_i32 = arith.constant 0 : i32
    %c0_i32_0 = arith.constant 0 : i32
    %c0_i32_1 = arith.constant 0 : i32
    return %c0_i32, %c0_i32_0 : i32, i32
  }
  func.func @transform_7(%arg0: i32) -> (i32, i32) {
    %c0_i32 = arith.constant 0 : i32
    %c0_i32_0 = arith.constant 0 : i32
    return %c0_i32, %arg0 : i32, i32
  }
  func.func @transform_8(%arg0: i32) -> (i32, i32) {
    %c0_i32 = arith.constant 0 : i32
    %c0_i32_0 = arith.constant 0 : i32
    return %c0_i32, %arg0 : i32, i32
  }
  func.func @transform_9(%arg0: i32) -> (i32, i32) {
    %c0_i32 = arith.constant 0 : i32
    %c0_i32_0 = arith.constant 0 : i32
    return %c0_i32, %arg0 : i32, i32
  }
}

</mosaic_0001>

<bundles_post_ra>
// kernel: actor_forward.1
= control target key start
LH: loop header
LB: loop body
LE: loop exit
PB: predicated region body
PF: predicated region fallthrough
CT: control target
= control target key end

     0   :  { %vm91_vm0 = vcmask 261120   ;;  %v726_v3 = vmov 0   ;;  %vm285_vm1 = vcmask 523264   ;;  %vm728_vm2 = vmmov 0   ;;  %s923_s0 = inlined_call_operand.vmem [shape: f32[32,128], index: 0, kind: input, shape index: {}]   ;;  %s924_s1 = inlined_call_operand.vmem [shape: f32[64,32], index: 1, kind: input, shape index: {}]   ;;  %s925_s2 = inlined_call_operand.vmem [shape: f32[64,1], index: 2, kind: input, shape index: {}]   ;;  %s926_s4 = inlined_call_operand.vmem [shape: f32[64,1], index: 4, kind: input, shape index: {}]   ;;  %s927_s6 = inlined_call_operand.vmem [shape: f32[8,1], index: 6, kind: input, shape index: {}]   ;;  %s928_s3 = inlined_call_operand.vmem [shape: f32[64,64], index: 3, kind: input, shape index: {}]   ;;  %s929_s5 = inlined_call_operand.vmem [shape: f32[8,64], index: 5, kind: input, shape index: {}]   ;;  %s930_s7 = inlined_call_operand.vmem [shape: f32[8,128], index: 7, kind: input, shape index: {}]   ;;  %s931_s9 = inlined_call_operand.vmem [shape: s32[1,128], index: 9, kind: output, shape index: {1}]   ;;  %s932_s8 = inlined_call_operand.vmem [shape: f32[16,128], index: 8, kind: output, shape index: {0}]  }
   0x1   :  { %v31_v0 = vld [vmem:[%s923_s0] sm:$0xff]  ;;  %v32_v1 = vld [vmem:[%s923_s0 + $0x8] sm:$0xff]  ;;  %v33_v2 = vld [vmem:[%s923_s0 + $0x10] sm:$0xff]  ;;  %718 = vset.pattern.permute.xlu0 %v726_v3  ;;  %719 = vset.pattern.permute.xlu1 %v726_v3 }
   0x2   :  { %v678_v4 = vpack.c.bf16 %v32_v1, %v31_v0  ;;  %v34_v5 = vld [vmem:[%s923_s0 + $0x18] sm:$0xff]  ;;  %v35_v6 = vld [vmem:[%s924_s1] sm:$0xff]  ;;  %v45_v9 = vld [vmem:[%s925_s2 + $0x10] sm:$0xff] }
   0x3   :  { %v682_v7 = vpack.c.bf16 %v34_v5, %v33_v2  ;;  %619 = vmatprep.mubr.msk.f32.mxu0 %vm91_vm0, %v35_v6  ;;  %v43_v8 = vld [vmem:[%s925_s2] sm:$0xff]  ;;  %v44_v10 = vld [vmem:[%s925_s2 + $0x8] sm:$0xff]  ;;  %63 = vperm.xlu1 %719, %v45_v9   ;;  %v46_v11 = vld [vmem:[%s925_s2 + $0x18] sm:$0xff] }
   0x4   :  { %679 = vmatprep.subr.bf16.mxu0 %v678_v4  ;;  %53 = vperm.xlu0 %718, %v43_v8   ;;  %v36_v12 = vld [vmem:[%s924_s1 + $0x8] sm:$0xff]  ;;  %v37_v13 = vld [vmem:[%s924_s1 + $0x10] sm:$0xff]  ;;  %v47_v14 = vld [vmem:[%s925_s2 + $0x20] sm:$0xff] }
   0x5   :  { %681 = vmatpush3.bf16.msra.mxu0 %v678_v4  ;;  %v48_v15 = vld [vmem:[%s925_s2 + $0x28] sm:$0xff]  ;;  %v38_v16 = vld [vmem:[%s924_s1 + $0x18] sm:$0xff]  ;;  %v39_v17 = vld [vmem:[%s924_s1 + $0x20] sm:$0xff] }
   0x6   :  { %683 = vmatprep.subr.bf16.mxu0 %v682_v7  ;;  %v49_v18 = vld [vmem:[%s925_s2 + $0x30] sm:$0xff]  ;;  %v50_v19 = vld [vmem:[%s925_s2 + $0x38] sm:$0xff]  ;;  %v40_v20 = vld [vmem:[%s924_s1 + $0x28] sm:$0xff] }
   0x7   :  { %68 = vperm.xlu1 %719, %v46_v11   ;;  %v41_v21 = vld [vmem:[%s924_s1 + $0x30] sm:$0xff]  ;;  %v237_v22 = vld [vmem:[%s926_s4] sm:$0xff]  ;;  %v238_v23 = vld [vmem:[%s926_s4 + $0x8] sm:$0xff] }
   0x8   :  { %58 = vperm.xlu0 %718, %v44_v10   ;;  %v42_v24 = vld [vmem:[%s924_s1 + $0x38] sm:$0xff]  ;;  %v239_v25 = vld [vmem:[%s926_s4 + $0x10] sm:$0xff]  ;;  %v241_v27 = vld [vmem:[%s926_s4 + $0x20] sm:$0xff] }
   0x9   :  { %685 = vmatpush3.bf16.msra.mxu0 %v682_v7  ;;  %v240_v26 = vld [vmem:[%s926_s4 + $0x18] sm:$0xff]  ;;  %v242_v28 = vld [vmem:[%s926_s4 + $0x28] sm:$0xff]  ;;  %v243_v29 = vld [vmem:[%s926_s4 + $0x30] sm:$0xff] }
   0xa   :  { %v244_v30 = vld [vmem:[%s926_s4 + $0x38] sm:$0xff]  ;;  %v424_v31 = vld [vmem:[%s927_s6] sm:$0xff]  ;;  %v230_v5 = vld [vmem:[%s928_s3 + $0x8] sm:$0xff] }
   0xb   :  { %78 = vperm.xlu1 %719, %v48_v15   ;;  %v229_v32 = vld [vmem:[%s928_s3] sm:$0xff]  ;;  %v231_v6 = vld [vmem:[%s928_s3 + $0x10] sm:$0xff]  ;;  %v232_v7 = vld [vmem:[%s928_s3 + $0x18] sm:$0xff] }
   0xc   :  { %620 = vmatmul.mubr.msk.f32.vlgmr.msra.gmra.mrb[0].mxu0 %vm91_vm0, %v36_v12  ;;  %73 = vperm.xlu0 %718, %v47_v14   ;;  %v233_v8 = vld [vmem:[%s928_s3 + $0x20] sm:$0xff]  ;;  %v234_v9 = vld [vmem:[%s928_s3 + $0x28] sm:$0xff]  ;;  %v235_v10 = vld [vmem:[%s928_s3 + $0x30] sm:$0xff]  ;;  %v727_v12 = vmov 0.0|0.0  }
   0xd   :  { %622 = vmatprep.mubr.msk.f32.mxu0 %vm91_vm0, %v37_v13  ;;  %647 = vmatprep.mubr.msk.f32.mxu1 %vm285_vm1, %v229_v32  ;;  %v236_v11 = vld [vmem:[%s928_s3 + $0x38] sm:$0xff]  ;;  %v729_v13 = vmov 0.0  }
   0xe   :  { %702 = vmatprep.subr.bf16.mxu0 %v727_v12 }
   0xf   :  { %88 = vperm.xlu1 %719, %v50_v19  }
  0x10   :  { %623 = vmatmul.mubr.msk.f32.gmra.mrb[2].mxu0 %vm91_vm0, %v38_v16  ;;  %83 = vperm.xlu0 %718, %v49_v18  }
  0x11   :  { %625 = vmatprep.mubr.msk.f32.mxu0 %vm91_vm0, %v39_v17 }
  0x13   :  { %252 = vperm.xlu1 %719, %v238_v23  }
  0x14   :  { %626 = vmatmul.mubr.msk.f32.gmra.mrb[4].mxu0 %vm91_vm0, %v40_v20  ;;  %247 = vperm.xlu0 %718, %v237_v22  }
  0x15   :  { %628 = vmatprep.mubr.msk.f32.mxu0 %vm91_vm0, %v41_v21 }
  0x17   :  { %262 = vperm.xlu1 %719, %v240_v26  }
  0x18   :  { %629 = vmatmul.mubr.msk.f32.gmra.mrb[6].mxu0 %vm91_vm0, %v42_v24  ;;  %257 = vperm.xlu0 %718, %v239_v25  }
  0x19   :  { %675 = vmatprep.mubr.msk.f32.mxu0 %vm728_vm2, %v729_v13 }
  0x1b   :  { %272 = vperm.xlu1 %719, %v242_v28  }
  0x1c   :  { %267 = vperm.xlu0 %718, %v241_v27  }
  0x1f   :  { %282 = vperm.xlu1 %719, %v244_v30  }
  0x20   :  { %277 = vperm.xlu0 %718, %v243_v29  }
  0x24   :  { %427 = vperm.xlu0 %718, %v424_v31  }
  0x82   :  { %v64_v34 = vpop.permute.xlu1 %63 }
  0x83   :  { %v54_v33 = vpop.permute.xlu0 %53 }
  0x86   :  { %v69_v36 = vpop.permute.xlu1 %68 }
  0x87   :  { %v59_v35 = vpop.permute.xlu0 %58 }
  0x8a   :  { %v79_v46 = vpop.permute.xlu1 %78 }
  0x8b   :  { %v74_v49 = vpop.permute.xlu0 %73 }
  0x8e   :  { %v89_v58 = vpop.permute.xlu1 %88 }
  0x8f   :  { %v84_v61 = vpop.permute.xlu0 %83 }
  0x92   :  { %v253_v14 = vpop.permute.xlu1 %252 }
  0x93   :  { %v248_v15 = vpop.permute.xlu0 %247 }
  0x96   :  { %v263_v16 = vpop.permute.xlu1 %262 }
  0x97   :  { %v258_v18 = vpop.permute.xlu0 %257 }
  0x9a   :  { %v273_v27 = vpop.permute.xlu1 %272 }
  0x9b   :  { %v268_v30 = vpop.permute.xlu0 %267 }
  0xdf   :  { %v621_v37 = vpop.f32.mrb[0].mxu0 }
  0xe0   :  { %v188_v38 = vadd.f32 %v621_v37, %v59_v35  ;;  %v182_v39 = vpop.f32.mrb[1].mxu0 }
  0xe1   :  { %v183_v40 = vadd.f32 %v182_v39, %v54_v33  ;;  %v283_v39 = vpop.permute.xlu1 %282 }
  0xe2   :  { %v222_v41 = vmax.f32 %v188_v38, 0.0 }
  0xe3   :  { %v221_v42 = vmax.f32 %v183_v40, 0.0  ;;  %v624_v43 = vpop.f32.mrb[2].mxu0 }
  0xe4   :  { %v198_v44 = vadd.f32 %v624_v43, %v69_v36  ;;  %v192_v45 = vpop.f32.mrb[3].mxu0 }
  0xe5   :  { %v193_v47 = vadd.f32 %v192_v45, %v64_v34  ;;  %v686_v48 = vpack.c.bf16 %v222_v41, %v221_v42  ;;  %v278_v42 = vpop.permute.xlu0 %277 }
  0xe6   :  { %v224_v50 = vmax.f32 %v198_v44, 0.0 }
  0xe7   :  { %v223_v51 = vmax.f32 %v193_v47, 0.0  ;;  %v627_v52 = vpop.f32.mrb[4].mxu0  ;;  %687 = vmatprep.subr.bf16.mxu1 %v686_v48 }
  0xe8   :  { %v208_v53 = vadd.f32 %v627_v52, %v79_v46  ;;  %v202_v54 = vpop.f32.mrb[5].mxu0  ;;  %689 = vmatpush3.bf16.msra.mxu1 %v686_v48 }
  0xe9   :  { %v690_v55 = vpack.c.bf16 %v224_v50, %v223_v51  ;;  %v203_v56 = vadd.f32 %v202_v54, %v74_v49  ;;  %v423_v50 = vld [vmem:[%s929_s5] sm:$0xff]  ;;  %v428_v51 = vpop.permute.xlu0 %427 }
  0xea   :  { %v226_v57 = vmax.f32 %v208_v53, 0.0 }
  0xeb   :  { %v225_v59 = vmax.f32 %v203_v56, 0.0  ;;  %v630_v60 = vpop.f32.mrb[6].mxu0  ;;  %691 = vmatprep.subr.bf16.mxu1 %v690_v55 }
  0xec   :  { %v218_v62 = vadd.f32 %v630_v60, %v89_v58  ;;  %v212_v63 = vpop.f32.mrb[7].mxu0  ;;  %693 = vmatpush3.bf16.msra.mxu1 %v690_v55 }
  0xed   :  { %v694_v0 = vpack.c.bf16 %v226_v57, %v225_v59  ;;  %v213_v1 = vadd.f32 %v212_v63, %v84_v61  ;;  %v525_v61 = vld [vmem:[%s930_s7] sm:$0xff] }
  0xee   :  { %v228_v2 = vmax.f32 %v218_v62, 0.0 }
  0xef   :  { %v227_v3 = vmax.f32 %v213_v1, 0.0  ;;  %695 = vmatprep.subr.bf16.mxu1 %v694_v0 }
  0xf0   :  { %697 = vmatpush3.bf16.msra.mxu1 %v694_v0 }
  0xf1   :  { %v698_v4 = vpack.c.bf16 %v228_v2, %v227_v3 }
  0xf3   :  { %699 = vmatprep.subr.bf16.mxu1 %v698_v4 }
  0xf4   :  { %701 = vmatpush3.bf16.msra.mxu1 %v698_v4  ;;  %v533_v4 = vlaneseq }
  0xf7   :  { %648 = vmatmul.mubr.msk.f32.vlgmr.msra.gmra.mrb[0].mxu1 %vm285_vm1, %v230_v5 }
  0xf8   :  { %650 = vmatprep.mubr.msk.f32.mxu1 %vm285_vm1, %v231_v6 }
  0xfb   :  { %651 = vmatmul.mubr.msk.f32.gmra.mrb[2].mxu1 %vm285_vm1, %v232_v7  ;;  %v534_v7 = vshrl.u32 %v533_v4, 7 }
  0xfc   :  { %653 = vmatprep.mubr.msk.f32.mxu1 %vm285_vm1, %v233_v8 }
  0xff   :  { %654 = vmatmul.mubr.msk.f32.gmra.mrb[4].mxu1 %vm285_vm1, %v234_v9 }
 0x100   :  { %656 = vmatprep.mubr.msk.f32.mxu1 %vm285_vm1, %v235_v10 }
 0x103   :  { %657 = vmatmul.mubr.msk.f32.gmra.mrb[6].mxu1 %vm285_vm1, %v236_v11 }
 0x1ca   :  { %v649_v17 = vpop.f32.mrb[0].mxu1 }
 0x1cb   :  { %v382_v19 = vadd.f32 %v649_v17, %v253_v14  ;;  %v376_v20 = vpop.f32.mrb[1].mxu1 }
 0x1cc   :  { %v377_v21 = vadd.f32 %v376_v20, %v248_v15 }
 0x1cd   :  { %v416_v22 = vmax.f32 %v382_v19, 0.0 }
 0x1ce   :  { %v415_v23 = vmax.f32 %v377_v21, 0.0  ;;  %v652_v24 = vpop.f32.mrb[2].mxu1 }
 0x1cf   :  { %v392_v25 = vadd.f32 %v652_v24, %v263_v16  ;;  %v386_v26 = vpop.f32.mrb[3].mxu1 }
 0x1d0   :  { %v703_v28 = vpack.c.bf16 %v416_v22, %v415_v23  ;;  %v387_v29 = vadd.f32 %v386_v26, %v258_v18 }
 0x1d1   :  { %v418_v31 = vmax.f32 %v392_v25, 0.0 }
 0x1d2   :  { %v417_v32 = vmax.f32 %v387_v29, 0.0  ;;  %v655_v33 = vpop.f32.mrb[4].mxu1  ;;  %704 = vmatpush3.bf16.msra.mxu0 %v703_v28 }
 0x1d3   :  { %v402_v34 = vadd.f32 %v655_v33, %v273_v27  ;;  %v396_v35 = vpop.f32.mrb[5].mxu1  ;;  %705 = vmatprep.subr.bf16.mxu0 %v727_v12 }
 0x1d4   :  { %v706_v36 = vpack.c.bf16 %v418_v31, %v417_v32  ;;  %v397_v37 = vadd.f32 %v396_v35, %v268_v30 }
 0x1d5   :  { %v420_v38 = vmax.f32 %v402_v34, 0.0 }
 0x1d6   :  { %v419_v40 = vmax.f32 %v397_v37, 0.0  ;;  %v658_v41 = vpop.f32.mrb[6].mxu1  ;;  %707 = vmatpush3.bf16.msra.mxu0 %v706_v36 }
 0x1d7   :  { %v412_v43 = vadd.f32 %v658_v41, %v283_v39  ;;  %v406_v44 = vpop.f32.mrb[7].mxu1  ;;  %708 = vmatprep.subr.bf16.mxu0 %v727_v12 }
 0x1d8   :  { %v709_v45 = vpack.c.bf16 %v420_v38, %v419_v40  ;;  %v407_v46 = vadd.f32 %v406_v44, %v278_v42 }
 0x1d9   :  { %v422_v47 = vmax.f32 %v412_v43, 0.0 }
 0x1da   :  { %v421_v48 = vmax.f32 %v407_v46, 0.0  ;;  %710 = vmatpush3.bf16.msra.mxu0 %v709_v45 }
 0x1db   :  { %711 = vmatprep.subr.bf16.mxu0 %v727_v12 }
 0x1dc   :  { %v712_v49 = vpack.c.bf16 %v422_v47, %v421_v48 }
 0x1de   :  { %713 = vmatpush3.bf16.msra.mxu0 %v712_v49 }
 0x1e1   :  { %676 = vmatmul.mubr.msk.f32.vlgmr.msra.gmra.mrb[8].mxu0 %vm285_vm1, %v423_v50 }
 0x2b4   :  { %v499_v52 = vpop.f32.mrb[8].mxu0 }
 0x2b5   :  { %v500_v53 = vadd.f32 %v499_v52, %v428_v51  ;;  %v677_v54 = vpop.f32.mrb[9].mxu0 }
 0x2b7   :  { %v503_v55 = vrot.slane %v500_v53, 4 }
 0x2b9   :  { %v504_v56 = vmax.f32 %v500_v53, %v503_v55 }
 0x2bb   :  { %v505_v57 = vrot.slane %v504_v56, 2 }
 0x2bd   :  { %v506_v58 = vmax.f32 %v504_v56, %v505_v57 }
 0x2bf   :  { %v507_v59 = vrot.slane %v506_v58, 1 }
 0x2c1   :  { %v508_v60 = vmax.f32 %v506_v58, %v507_v59 }
 0x2c3   :  { %v509_v62 = vsub.f32 %v500_v53, %v508_v60 }
 0x2c5   :  { %v510_v63 = vmul.f32 1.442695, %v509_v62  ;;  %v526_v0 = vadd.f32 %v525_v61, %v509_v62 }
 0x2c7   :  { %720 = vpow2.f32 %v510_v63  ;;  %v527_v1 = vrot.slane %v526_v0, 4 }
 0x2c9   :  { %v528_v2 = vmax.f32 %v526_v0, %v527_v1 }
 0x2cb   :  { %v529_v3 = vrot.slane %v528_v2, 2 }
 0x2cd   :  { %v530_v5 = vmax.f32 %v528_v2, %v529_v3 }
 0x2cf   :  { %v531_v6 = vrot.slane %v530_v5, 1 }
 0x2d1   :  { %v721_v8 = vpop.eup %720  ;;  %v532_v9 = vmax.f32 %v530_v5, %v531_v6 }
 0x2d2   :  { %v512_v10 = vrot.slane %v721_v8, 4 }
 0x2d3   :  { %vm535_vm3 = vcmp.ge.f32.partialorder %v526_v0, %v532_v9 }
 0x2d4   :  { %v513_v11 = vadd.f32 %v721_v8, %v512_v10  ;;  %v536_v12 = vsel %vm535_vm3, %v534_v7, 8 }
 0x2d5   :  { %v537_v13 = vrot.slane %v536_v12, 4 }
 0x2d6   :  { %v514_v14 = vrot.slane %v513_v11, 2 }
 0x2d7   :  { %vm538_vm4 = vcmp.lt.s32.totalorder %v536_v12, %v537_v13 }
 0x2d8   :  { %v515_v15 = vadd.f32 %v514_v14, %v513_v11  ;;  %v539_v16 = vsel %vm538_vm4, %v536_v12, %v537_v13 }
 0x2d9   :  { %v540_v17 = vrot.slane %v539_v16, 2 }
 0x2da   :  { %v516_v18 = vrot.slane %v515_v15, 1 }
 0x2db   :  { %vm541_vm5 = vcmp.lt.s32.totalorder %v539_v16, %v540_v17 }
 0x2dc   :  { %v517_v19 = vadd.f32 %v516_v18, %v515_v15  ;;  %v542_v20 = vsel %vm541_vm5, %v539_v16, %v540_v17 }
 0x2dd   :  { %v543_v21 = vrot.slane %v542_v20, 1 }
 0x2de   :  { %722 = vlog2.f32 %v517_v19 }
 0x2df   :  { %724 = vrcp.f32 %v517_v19  ;;  %vm544_vm6 = vcmp.lt.s32.totalorder %v542_v20, %v543_v21 }
 0x2e0   :  { %v545_v22 = vsel %vm544_vm6, %v542_v20, %v543_v21 }
 0x2e1   :  { %vm546_vm7 = vcmp.lt.s32.totalorder %v545_v22, 7 }
 0x2e2   :  { %v547_v23 = vsel %vm546_vm7, %v545_v22, 7 }
 0x2e3   :  { %548 = vst [vmem:[%s931_s9] sm:$0x1] %v547_v23 }
 0x2e8   :  { %v723_v24 = vpop.eup %722 }
 0x2e9   :  { %v725_v25 = vpop.eup %724  ;;  %v519_v26 = vmul.f32 0.6931472, %v723_v24 }
 0x2ea   :  { %v522_v27 = vmul.f32 %v725_v25, %v721_v8 }
 0x2eb   :  { %v520_v28 = vsub.f32 %v509_v62, %v519_v26 }
 0x2ec   :  { %524 = vst [vmem:[%s932_s8 + $0x8] sm:$0xff] %v522_v27 }
 0x2ed   :  { %523 = vst [vmem:[%s932_s8] sm:$0xff] %v520_v28 }

</bundles_post_ra>
